<compile_context>
chip_gen: v7x
topology: tpu7x:2x2x1
jax: 0.10.0
libtpu: 0.0.40
codegen_flags: <defaults>
</compile_context>

<pallas_src>
import functools

import jax
import jax.numpy as jnp
from jax.experimental import pallas as pl
from jax.experimental.pallas import tpu as pltpu


def _rmsnorm_kernel(x_ref, w_ref, o_ref, *, eps, cast_to_half):
    # Single load + single cast; reuse x_f32 for both the variance and the
    # normalized product.  (VALU/EUP work is fully hidden under DMA here.)
    x_f32 = x_ref[...].astype(jnp.float32)
    variance = jnp.mean(x_f32 * x_f32, axis=-1, keepdims=True)
    y = x_f32 * jax.lax.rsqrt(variance + eps)
    if cast_to_half:
        # Matches the torch branch: cast y to weight dtype when weight is half,
        # then multiply in that dtype.
        y = y.astype(o_ref.dtype)
    o_ref[...] = (w_ref[...] * y).astype(o_ref.dtype)


def _sublane_multiple(dtype):
    bits = jnp.dtype(dtype).itemsize * 8
    return max(8, 256 // bits)  # 8 for f32, 16 for bf16/f16, 32 for int8/fp8


def _tpu_generation_info():
    """Returns (vmem_capacity_bytes, num_tensorcores_per_chip)."""
    vmem = None
    try:
        vmem = int(pltpu.get_tpu_info().vmem_capacity_bytes)
    except Exception:
        pass
    kind = ""
    try:
        kind = jax.devices()[0].device_kind.lower()
    except Exception:
        pass
    is_v7 = "v7" in kind
    if vmem is None:
        # Per-generation constants instead of a blanket 64 MiB fallback, so
        # 128 MiB chips (v5e/v6e) don't get their tile budget silently halved.
        vmem = (64 << 20) if is_v7 else (128 << 20)
    num_cores = 2 if is_v7 else 1
    return vmem, num_cores


def _pick_row_tile(n_rows, hidden, x_dtype, out_dtype, vmem_cap, num_cores):
    sub = max(_sublane_multiple(x_dtype), _sublane_multiple(out_dtype))
    xb = jnp.dtype(x_dtype).itemsize
    ob = jnp.dtype(out_dtype).itemsize
    # Budget: double-buffered x + out blocks PLUS the two fp32 in-kernel
    # temporaries (x_f32 and y, ~row_tile*hidden*4 each), within ~half of
    # physical VMEM (headroom for weight buffers and compiler scratch).
    budget = vmem_cap // 2
    bytes_per_row = 2 * hidden * (xb + ob) + 2 * hidden * 4
    tile = max(sub, (budget // bytes_per_row) // sub * sub)
    # Generation-dependent cap: 512 costs ~1% roofline vs 1024 but frees half
    # the block VMEM on the 64 MiB (v7x) chip.
    cap = 512 if vmem_cap <= (64 << 20) else 1024
    tile = min(tile, cap)
    tile = min(tile, pl.cdiv(n_rows, sub) * sub)     # never exceed the rows
    if num_cores > 1 and n_rows > sub:
        # Guarantee at least num_cores balanced grid steps so the "parallel"
        # row axis can actually shard across both v7x TensorCores.
        per_core = max(sub, (pl.cdiv(n_rows, num_cores) // sub) * sub)
        tile = min(tile, per_core)
    return int(tile)


def llama_rms_norm(hidden_states, weight, eps=1e-6, *, row_tile=None):
    """hidden_states: (..., hidden); weight: (hidden,)."""
    orig_shape = hidden_states.shape
    hidden = orig_shape[-1]
    x2d = hidden_states.reshape(-1, hidden)
    n_rows = x2d.shape[0]

    # Output dtype follows the PyTorch module: weight dtype when weight is
    # half precision (the module casts y to weight.dtype), else fp32-promoted.
    cast_to_half = jnp.dtype(weight.dtype) in (jnp.dtype(jnp.float16),
                                               jnp.dtype(jnp.bfloat16))
    out_dtype = weight.dtype if cast_to_half else jnp.promote_types(
        weight.dtype, jnp.float32)

    vmem_cap, num_cores = _tpu_generation_info()
    if row_tile is None:
        row_tile = _pick_row_tile(n_rows, hidden, x2d.dtype, out_dtype,
                                  vmem_cap, num_cores)

    # Ragged grid: no jnp.pad / final slice (each of those is a full extra HBM
    # read+write of the activation tensor).  Boundary-block garbage rows only
    # affect their own (masked) output rows since the reduction is per-row.
    grid_rows = pl.cdiv(n_rows, row_tile)

    w2d = weight.reshape(1, hidden)

    xb = jnp.dtype(x2d.dtype).itemsize
    ob = jnp.dtype(out_dtype).itemsize
    wb = jnp.dtype(weight.dtype).itemsize
    cost = pl.CostEstimate(
        flops=4 * n_rows * hidden,
        transcendentals=n_rows,                           # one rsqrt per row
        bytes_accessed=n_rows * hidden * (xb + ob) + hidden * wb,
    )

    # VMEM: double-buffered x/out blocks + weight buffers + fp32 temporaries,
    # plus headroom, capped at physical VMEM (safe on v7x 64 MiB as well as
    # v5e/v6e 128 MiB).
    block_bytes = (2 * row_tile * hidden * (xb + ob)     # x/out double-buffered
                   + 2 * hidden * wb                      # weight buffers
                   + 2 * row_tile * hidden * 4)           # x_f32 + y scratch
    vmem_limit = min(vmem_cap, block_bytes + (16 << 20))

    # TODO(synk): on v7x, sweep pipeline_mode=pl.Buffered(3) on the x input
    # BlockSpec once a profile shows exposed per-step overhead.
    out = pl.pallas_call(
        functools.partial(_rmsnorm_kernel, eps=eps, cast_to_half=cast_to_half),
        out_shape=jax.ShapeDtypeStruct((n_rows, hidden), out_dtype),
        grid_spec=pltpu.PrefetchScalarGridSpec(
            num_scalar_prefetch=0,
            grid=(grid_rows,),
            in_specs=[
                pl.BlockSpec((row_tile, hidden), lambda i: (i, 0)),
                pl.BlockSpec((1, hidden), lambda i: (0, 0)),
            ],
            out_specs=pl.BlockSpec((row_tile, hidden), lambda i: (i, 0)),
        ),
        compiler_params=pltpu.CompilerParams(
            # "parallel" lets v7x shard the row loop across its 2 TensorCores;
            # neutral on v5e/v6e (single TC).
            dimension_semantics=("parallel",),
            vmem_limit_bytes=vmem_limit,
        ),
        cost_estimate=cost,
    )(x2d, w2d)

    return out.reshape(orig_shape[:-1] + (hidden,))


if __name__ == "__main__":
    eps = 1e-6
    root = jax.random.PRNGKey(0)
    k1, k2, k3 = jax.random.split(root, 3)

    # Case 1: f32 activations + f32 weight (module default: torch.ones).
    batch, seq, hidden = 2, 8, 128
    x = jax.random.normal(k1, (batch, seq, hidden), dtype=jnp.float32)
    w = jnp.ones((hidden,), dtype=jnp.float32)
    out = jax.block_until_ready(llama_rms_norm(x, w, eps=eps))
    var = jnp.mean(x.astype(jnp.float32) ** 2, axis=-1, keepdims=True)
    ref = w * (x.astype(jnp.float32) * jax.lax.rsqrt(var + eps))
    assert out.shape == x.shape and out.dtype == jnp.float32
    assert jnp.allclose(out, ref, atol=1e-5, rtol=1e-5)

    # Case 2: bf16 activations + bf16 weight, row count that doesn't divide the
    # tile (exercises the ragged boundary block and the half-precision cast).
    b2, s2 = 3, 5
    x2 = jax.random.normal(k2, (b2, s2, hidden), dtype=jnp.bfloat16)
    w2 = jax.random.normal(k3, (hidden,), dtype=jnp.bfloat16)
    out2 = jax.block_until_ready(llama_rms_norm(x2, w2, eps=eps))
    var2 = jnp.mean(x2.astype(jnp.float32) ** 2, axis=-1, keepdims=True)
    y2 = (x2.astype(jnp.float32) * jax.lax.rsqrt(var2 + eps)).astype(jnp.bfloat16)
    ref2 = w2 * y2
    assert out2.shape == x2.shape and out2.dtype == jnp.bfloat16
    assert jnp.allclose(out2.astype(jnp.float32), ref2.astype(jnp.float32),
                        atol=2e-2, rtol=2e-2)

    print("KERNEL_OK")
</pallas_src>

<mosaic_0001>
module attributes {stable_mosaic.version = 11 : i64} {
  func.func @_rmsnorm_kernel(%arg0: i32, %arg1: memref<16x128xf32, #tpu.memory_space<vmem>>, %arg2: memref<1x128xf32, #tpu.memory_space<vmem>>, %arg3: memref<16x128xf32, #tpu.memory_space<vmem>>) attributes {dimension_semantics = [#tpu.dimension_semantics<parallel>], iteration_bounds = array<i64: 1>, scalar_prefetch = 0 : i64, scratch_operands = 0 : i64, tpu.core_type = #tpu.core_type<tc>, window_params = [{transform_indices = @transform_0, window_bounds = array<i64: 16, 128>}, {pipeline_mode = #tpu.pipeline_mode<synchronous>, transform_indices = @transform_1, window_bounds = array<i64: 1, 128>}, {transform_indices = @transform_2, window_bounds = array<i64: 16, 128>}]} {
    %c0 = arith.constant 0 : index
    %c0_0 = arith.constant 0 : index
    %0 = vector.load %arg1[%c0, %c0_0] : memref<16x128xf32, #tpu.memory_space<vmem>>, vector<16x128xf32>
    %1 = arith.mulf %0, %0 : vector<16x128xf32>
    %cst = arith.constant dense<0.000000e+00> : vector<16xf32>
    %2 = vector.multi_reduction <add>, %1, %cst [1] : vector<16x128xf32> to vector<16xf32>
    %3 = vector.shape_cast %2 : vector<16xf32> to vector<16x1xf32>
    %cst_1 = arith.constant 1.280000e+02 : f32
    %4 = vector.broadcast %cst_1 : f32 to vector<16x1xf32>
    %5 = arith.divf %3, %4 : vector<16x1xf32>
    %cst_2 = arith.constant 9.99999997E-7 : f32
    %6 = vector.broadcast %cst_2 : f32 to vector<16x1xf32>
    %7 = arith.addf %5, %6 : vector<16x1xf32>
    %8 = math.rsqrt %7 : vector<16x1xf32>
    %9 = vector.broadcast %8 : vector<16x1xf32> to vector<16x128xf32>
    %10 = arith.mulf %0, %9 : vector<16x128xf32>
    %c0_3 = arith.constant 0 : index
    %c0_4 = arith.constant 0 : index
    %11 = vector.load %arg2[%c0_3, %c0_4] : memref<1x128xf32, #tpu.memory_space<vmem>>, vector<1x128xf32>
    %12 = vector.broadcast %11 : vector<1x128xf32> to vector<16x128xf32>
    %13 = arith.mulf %12, %10 : vector<16x128xf32>
    %c0_5 = arith.constant 0 : index
    %c0_6 = arith.constant 0 : index
    %14 = vector.load %arg3[%c0_5, %c0_6] : memref<16x128xf32, #tpu.memory_space<vmem>>, vector<16x128xf32>
    tpu.vector_store %arg3[%c0_5, %c0_6], %13 {strides = array<i32>} : memref<16x128xf32, #tpu.memory_space<vmem>>, vector<16x128xf32>,
    return
  }
  func.func @transform_0(%arg0: i32) -> (i32, i32) {
    %c0_i32 = arith.constant 0 : i32
    %c0_i32_0 = arith.constant 0 : i32
    return %arg0, %c0_i32 : i32, i32
  }
  func.func @transform_1(%arg0: i32) -> (i32, i32) {
    %c0_i32 = arith.constant 0 : i32
    %c0_i32_0 = arith.constant 0 : i32
    %c0_i32_1 = arith.constant 0 : i32
    return %c0_i32, %c0_i32_0 : i32, i32
  }
  func.func @transform_2(%arg0: i32) -> (i32, i32) {
    %c0_i32 = arith.constant 0 : i32
    %c0_i32_0 = arith.constant 0 : i32
    return %arg0, %c0_i32 : i32, i32
  }
}

</mosaic_0001>

<bundles_post_ra>
// kernel: tpu_custom_call.1
= control target key start
LH: loop header
LB: loop body
LE: loop exit
PB: predicated region body
PF: predicated region fallthrough
CT: control target
= control target key end

     0   :  { %7 = vsyncpa [#allocation3], 0  ;;  %s180_s0 = inlined_call_operand.hbm [shape: f32[16,128], index: 0, kind: input, shape index: {}]   ;;  %s181_s1 = inlined_call_operand.vmem [shape: f32[1,128], index: 1, kind: input, shape index: {}]   ;;  %s182_s2 = inlined_call_operand.hbm [shape: f32[16,128], index: 2, kind: output, shape index: {}]  }
   0x1   :  { %8 = vsyncpa [#allocation4], 0  ;;  %s128_s9 = smov [#allocation2]   ;;  %s80_s13 = scalar_lea.hbm %s180_s0, 256 }
   0x2   :  { %s14_s10 = sshll.u32 %s128_s9, 4  ;;  %p81_p0 = scmp.ne.s32.totalorder %s180_s0, %s80_s13  ;;  %s15_s10 = int_to_ptr.vmem [resolvable:$true] %s14_s10 }
   0x3   :  { %p84_p1 = scmp.lt.u32.totalorder %s80_s13, %s180_s0 }
   0x5   :  { %p86_p2 = pnand %p84_p1, %p81_p0 }
   0x7   :  { %89 = shalt.err (!%p86_p2)
}
   0x8   :  { %s90_s18 = scalar_lea.vmem %s15_s10, 256  ;;  %p95_p4 = scmp.lt.s32.totalorder %s15_s10, %s15_s10 }
   0x9   :  { %p91_p3 = scmp.ne.s32.totalorder %s15_s10, %s90_s18  ;;  %p96_p5 = scmp.lt.s32.totalorder %s90_s18, %s90_s18 }
   0xb   :  { %p97_p6 = por %p96_p5, %p95_p4 }
   0xd   :  { %p98_p7 = pnand %p97_p6, %p91_p3 }
   0xf   :  { %101 = shalt.err (!%p98_p7)
}
  0x10   :  { %s129_s19 = smov 128   ;;  %s130_s20 = smov 8  }
  0x11   :  { %20 = dma.hbm_to_vmem [thread:$0]  %s180_s0, 256, %s15_s10, [#allocation3], %s129_s19, %s129_s19, %s130_s20  }
  0x12   :  { %124 = dma.done.wait [#allocation3], 256  }
  0x13   :  { %125 = vsyncadd [#allocation3], 4294967040  ;;  %v26_v0 = vld [vmem:[#allocation2] sm:$0xff]  ;;  %v27_v1 = vld [vmem:[#allocation2 + $0x8] sm:$0xff]  ;;  %s131_s0 = smov [#allocation5]  }
  0x14   :  { %v28_v2 = vmul.f32 %v26_v0, %v26_v0  ;;  %v29_v3 = vmul.f32 %v27_v1, %v27_v1  ;;  %v71_v11 = vld [vmem:[%s181_s1] ss:$0 sm:$0xff]  ;;  %s59_s25 = sshll.u32 %s131_s0, 4  ;;  %s60_s25 = int_to_ptr.vmem [resolvable:$true] %s59_s25 }
  0x15   :  { %s102_s26 = scalar_lea.vmem %s60_s25, 256  ;;  %p107_p9 = scmp.lt.s32.totalorder %s60_s25, %s60_s25 }
  0x16   :  { %30 = vadd.xlane.f32.xlu0 %v28_v2  ;;  %p103_p8 = scmp.ne.s32.totalorder %s60_s25, %s102_s26  ;;  %p108_p10 = scmp.lt.s32.totalorder %s102_s26, %s102_s26 }
  0x18   :  { %p109_p11 = por %p108_p10, %p107_p9 }
  0x1a   :  { %32 = vadd.xlane.f32.xlu0 %v29_v3  ;;  %p110_p12 = pnand %p109_p11, %p103_p8 }
  0xa3   :  { %v31_v4 = vpop.xlane.xlu0 %30 }
  0xa4   :  { %v35_v5 = vmul.f32 0.0078125, %v31_v4 }
  0xa6   :  { %v37_v6 = vadd.f32 1e-06, %v35_v5 }
  0xa7   :  { %v33_v7 = vpop.xlane.xlu0 %32 }
  0xa8   :  { %76 = vrsqrt.f32 %v37_v6  ;;  %v36_v8 = vmul.f32 0.0078125, %v33_v7 }
  0xaa   :  { %v38_v9 = vadd.f32 1e-06, %v36_v8 }
  0xac   :  { %78 = vrsqrt.f32 %v38_v9 }
  0xb2   :  { %v77_v10 = vpop.eup %76 }
  0xb3   :  { %v41_v12 = vmul.f32 %v77_v10, %v26_v0 }
  0xb5   :  { %v50_v13 = vmul.f32 %v71_v11, %v41_v12 }
  0xb6   :  { %v79_v14 = vpop.eup %78 }
  0xb7   :  { %v42_v15 = vmul.f32 %v79_v14, %v27_v1  ;;  %52 = vst [vmem:[#allocation5] sm:$0xff] %v50_v13 }
  0xb9   :  { %v51_v16 = vmul.f32 %v71_v11, %v42_v15 }
  0xbb   :  { %53 = vst [vmem:[#allocation5 + $0x8] sm:$0xff] %v51_v16 }
  0xbc   :  { %113 = shalt.err (!%p110_p12)
}
  0xbd   :  { %s114_s1 = scalar_lea.hbm %s182_s2, 256 }
  0xbe   :  { %p115_p13 = scmp.ne.s32.totalorder %s182_s2, %s114_s1  ;;  %p118_p0 = scmp.lt.u32.totalorder %s114_s1, %s182_s2 }
  0xc0   :  { %p120_p1 = pnand %p118_p0, %p115_p13 }
  0xc2   :  { %123 = shalt.err (!%p120_p1)
}
  0xc3   :  { %65 = dma.vmem_to_hbm [thread:$0]  %s60_s25, 256, %s182_s2, [#allocation4], %s129_s19, %s129_s19, %s130_s20  }
  0xc4   :  { %126 = dma.done.wait [#allocation4], 256  }
  0xc5   :  { %127 = vsyncadd [#allocation4], 4294967040 }
  0xc6   :  { %69 = vsyncpa [#allocation3], 1 }
  0xc7   :  { %70 = vsyncpa [#allocation4], 1 }

</bundles_post_ra>
